<compile_context>
chip_gen: v7x
topology: tpu7x:2x2x1
jax: 0.10.0
libtpu: 0.0.40
codegen_flags: <defaults>
</compile_context>

<pallas_src>
import functools

import jax
import jax.numpy as jnp
import numpy as np
from jax.experimental import pallas as pl
from jax.experimental.pallas import tpu as pltpu


def _round_up(x, m):
    return ((x + m - 1) // m) * m


# ---------------------------------------------------------------------------
# Generic tiled GEMM + bias epilogue (used for both hoisted projections).
# ---------------------------------------------------------------------------
def _matmul_bias_kernel(a_ref, b_ref, bias_ref, o_ref, acc_ref):
    @pl.when(pl.program_id(2) == 0)
    def _():
        acc_ref[...] = jnp.zeros_like(acc_ref)

    acc_ref[...] += jnp.dot(a_ref[...], b_ref[...],
                            preferred_element_type=jnp.float32)

    @pl.when(pl.program_id(2) == pl.num_programs(2) - 1)
    def _():
        o_ref[...] = (acc_ref[...] + bias_ref[...]).astype(o_ref.dtype)


def _matmul_bias(a, b, bias, *, out_dtype=jnp.float32):
    """(M, K) @ (K, N) + bias(1, N); bf16 operands, f32 accumulation.

    M/N/K are zero-padded up to tile multiples and the result is sliced back,
    so arbitrary (non-tile-multiple) vocab / T*B sizes stay within VMEM.
    """
    M, K = a.shape
    Kb, N = b.shape
    assert K == Kb
    # Large tiles (>=512 reaches ~85% of HBM roofline), clamped for small dims.
    tm = min(512, _round_up(M, 16))
    tn = min(512, _round_up(N, 128))
    tk = min(512, _round_up(K, 128))
    Mp, Kp, Np = _round_up(M, tm), _round_up(K, tk), _round_up(N, tn)
    if Mp != M or Kp != K:
        a = jnp.pad(a, ((0, Mp - M), (0, Kp - K)))
    if Kp != K or Np != N:
        b = jnp.pad(b, ((0, Kp - K), (0, Np - N)))
    if Np != N:
        bias = jnp.pad(bias, ((0, 0), (0, Np - N)))
    grid = (Mp // tm, Np // tn, Kp // tk)

    out = pl.pallas_call(
        _matmul_bias_kernel,
        out_shape=jax.ShapeDtypeStruct((Mp, Np), out_dtype),
        grid_spec=pltpu.PrefetchScalarGridSpec(
            num_scalar_prefetch=0,
            grid=grid,
            in_specs=[
                pl.BlockSpec((tm, tk), lambda i, j, k: (i, k)),
                pl.BlockSpec((tk, tn), lambda i, j, k: (k, j)),
                pl.BlockSpec((1, tn), lambda i, j, k: (0, j)),
            ],
            out_specs=pl.BlockSpec((tm, tn), lambda i, j, k: (i, j)),
            scratch_shapes=[pltpu.VMEM((tm, tn), jnp.float32)],
        ),
        compiler_params=pltpu.CompilerParams(
            dimension_semantics=("parallel", "parallel", "arbitrary"),
            vmem_limit_bytes=48 * 1024 * 1024,
        ),
    )(a, b, bias)
    if Mp != M or Np != N:
        out = out[:M, :N]
    return out


# ---------------------------------------------------------------------------
# Recurrent LSTM kernel: consumes precomputed pre-gates, emits h states only.
# ---------------------------------------------------------------------------
def _lstm_recurrent_kernel(xg_ref, whh_hbm_ref, h_out_ref,
                           whh_vmem, h_ref, c_ref, dma_sem,
                           *, hidden_size, steps):
    @pl.when(pl.program_id(1) == 0)
    def _():
        # Grid-invariant W_hh^T: DMA it once per batch block into VMEM so it
        # stays single-buffered for the whole sequence (instead of being
        # double-buffered per grid step by the auto-pipeliner).
        cp = pltpu.make_async_copy(whh_hbm_ref, whh_vmem, dma_sem)
        cp.start()
        cp.wait()
        h_ref[...] = jnp.zeros_like(h_ref)
        c_ref[...] = jnp.zeros_like(c_ref)

    H = hidden_size

    def step(k, carry):
        h_prev, c_prev = carry
        # pre-gates already contain x_t @ W_ih^T + (b_ih + b_hh); stored bf16,
        # upcast to f32 here so the gate math stays in f32.
        gates = xg_ref[k].astype(jnp.float32) + jnp.dot(
            h_prev.astype(jnp.bfloat16), whh_vmem[...],
            preferred_element_type=jnp.float32)
        # PyTorch gate order: i, f, g, o.  H is a multiple of 128 so these
        # last-dim slices are lane-aligned (no XLU shuffles).
        i_g = jax.nn.sigmoid(gates[:, 0 * H:1 * H])
        f_g = jax.nn.sigmoid(gates[:, 1 * H:2 * H])
        g_g = jnp.tanh(gates[:, 2 * H:3 * H])
        o_g = jax.nn.sigmoid(gates[:, 3 * H:4 * H])
        c_new = f_g * c_prev + i_g * g_g
        h_new = o_g * jnp.tanh(c_new)
        h_out_ref[k] = h_new.astype(h_out_ref.dtype)
        return h_new, c_new

    h_fin, c_fin = jax.lax.fori_loop(0, steps, step,
                                     (h_ref[...], c_ref[...]), unroll=True)
    h_ref[...] = h_fin
    c_ref[...] = c_fin


def _lstm_recurrence(pre_gates, whh_t_bf16, hidden_size, steps_per_block):
    T, Bp, G = pre_gates.shape
    H = hidden_size
    # K time steps per grid iteration (amortizes ~0.35us per-step overhead).
    K = max(1, min(steps_per_block, T))
    while T % K:
        K -= 1
    # Split the (independent) batch rows across the two v7x TensorCores when
    # the batch is large enough; each core carries its own h/c scratch.
    n_b = 2 if (Bp >= 16 and Bp % 16 == 0) else 1
    Bb = Bp // n_b

    kernel = functools.partial(_lstm_recurrent_kernel,
                               hidden_size=H, steps=K)
    return pl.pallas_call(
        kernel,
        out_shape=jax.ShapeDtypeStruct((T, Bp, H), jnp.bfloat16),
        grid_spec=pltpu.PrefetchScalarGridSpec(
            num_scalar_prefetch=0,
            grid=(n_b, T // K),
            in_specs=[
                pl.BlockSpec((K, Bb, G), lambda b, t: (t, b, 0)),  # pre-gates
                pl.BlockSpec(memory_space=pl.ANY),                 # W_hh^T HBM
            ],
            out_specs=pl.BlockSpec((K, Bb, H), lambda b, t: (t, b, 0)),
            scratch_shapes=[
                pltpu.VMEM(whh_t_bf16.shape, jnp.bfloat16),  # W_hh^T (single)
                pltpu.VMEM((Bb, H), jnp.float32),            # h state
                pltpu.VMEM((Bb, H), jnp.float32),            # c state
                pltpu.SemaphoreType.DMA(()),
            ],
        ),
        compiler_params=pltpu.CompilerParams(
            # batch blocks independent; time axis is a true recurrence.
            dimension_semantics=("parallel", "arbitrary"),
            vmem_limit_bytes=48 * 1024 * 1024,
        ),
    )(pre_gates, whh_t_bf16)


# ---------------------------------------------------------------------------
# Parameter prep: transpose/cast weights ONCE (not per forward call).
# ---------------------------------------------------------------------------
def prepare_params(params):
    H = params["w_hh"].shape[1]
    assert H % 128 == 0, "hidden_size must be a multiple of 128 (lane-aligned gates)"
    return {
        "emb_bf16": params["embedding"].astype(jnp.bfloat16),             # (V, E)
        "wih_t": jnp.transpose(params["w_ih"]).astype(jnp.bfloat16),      # (E, 4H)
        "whh_t": jnp.transpose(params["w_hh"]).astype(jnp.bfloat16),      # (H, 4H)
        "lstm_bias": (params["b_ih"] + params["b_hh"])
                     .astype(jnp.float32).reshape(1, 4 * H),              # (1, 4H)
        "wout_t": jnp.transpose(params["w_out"]).astype(jnp.bfloat16),    # (H, V)
        "b_out": params["b_out"].astype(jnp.float32).reshape(1, -1),      # (1, V)
        "hidden_size": H,
    }


# ---------------------------------------------------------------------------
# Full forward (eval mode): embedding -> LSTM -> linear -> permute(0, 2, 1)
# ---------------------------------------------------------------------------
def lm_lstm_var_dropout_forward(tokens, prepared, *, steps_per_block=16):
    """tokens: int32 (T, B) time-major. Returns float32 (T, V, B)."""
    emb_w = prepared["emb_bf16"]
    H = prepared["hidden_size"]
    T, B = tokens.shape
    V, E = emb_w.shape

    # Pad batch to a multiple of 8 (f32 sublanes) using token id 0.  Padded
    # columns are independent LSTM rows and are sliced off the output, so the
    # real columns are unaffected.
    B_pad = (-B) % 8
    if B_pad:
        tokens = jnp.pad(tokens, ((0, 0), (0, B_pad)))
    Bp = B + B_pad

    # Embedding lookup (XLA gather on bf16 table) + variational dropout
    # (eval mode = identity).
    emb = jnp.take(emb_w, tokens, axis=0)                # (T, Bp, E) bf16

    # ---- hoisted input projection GEMM (LSTM biases folded in) ----------
    pre_gates = _matmul_bias(emb.reshape(T * Bp, E), prepared["wih_t"],
                             prepared["lstm_bias"], out_dtype=jnp.bfloat16)
    pre_gates = pre_gates.reshape(T, Bp, 4 * H)          # (T, Bp, 4H) bf16

    # ---- recurrent kernel: emits only h states ---------------------------
    h_all = _lstm_recurrence(pre_gates, prepared["whh_t"], H, steps_per_block)

    # ---- hoisted output projection GEMM (b_out folded in) ----------------
    logits = _matmul_bias(h_all.reshape(T * Bp, H), prepared["wout_t"],
                          prepared["b_out"], out_dtype=jnp.float32)

    # output.permute(0, 2, 1): (T, Bp, V) -> (T, V, Bp); drop batch padding.
    # (Kept only to mirror PyTorch; drop it if the consumer accepts (T, B, V).)
    out = jnp.transpose(logits.reshape(T, Bp, V), (0, 2, 1))
    return out[:, :, :B]


# ---------------------------------------------------------------------------
# Reference (pure JAX, f32) + synthetic parameters.
# ---------------------------------------------------------------------------
def _reference_forward(tokens, params):
    emb = jnp.take(params["embedding"], tokens, axis=0)   # (T, B, E) f32
    H = params["w_hh"].shape[1]
    B = tokens.shape[1]
    w_ih, w_hh = params["w_ih"], params["w_hh"]
    bias = params["b_ih"] + params["b_hh"]

    def step(carry, x_t):
        h, c = carry
        gates = x_t @ w_ih.T + h @ w_hh.T + bias
        i = jax.nn.sigmoid(gates[:, 0 * H:1 * H])
        f = jax.nn.sigmoid(gates[:, 1 * H:2 * H])
        g = jnp.tanh(gates[:, 2 * H:3 * H])
        o = jax.nn.sigmoid(gates[:, 3 * H:4 * H])
        c = f * c + i * g
        h = o * jnp.tanh(c)
        return (h, c), h

    init = (jnp.zeros((B, H), jnp.float32), jnp.zeros((B, H), jnp.float32))
    _, hs = jax.lax.scan(step, init, emb)
    logits = hs @ params["w_out"].T + params["b_out"]
    return jnp.transpose(logits, (0, 2, 1))               # (T, V, B)


def make_params(key, vocab_size, emb_size, hidden_size, pad_id=0):
    """Deterministic synthetic parameters matching the PyTorch module shapes."""
    ks = jax.random.split(key, 7)
    scale = 0.1
    emb_w = scale * jax.random.normal(ks[0], (vocab_size, emb_size), jnp.float32)
    emb_w = emb_w.at[pad_id].set(0.0)  # nn.Embedding(padding_idx=pad_id)
    return {
        "embedding": emb_w,
        "w_ih": scale * jax.random.normal(ks[1], (4 * hidden_size, emb_size), jnp.float32),
        "w_hh": scale * jax.random.normal(ks[2], (4 * hidden_size, hidden_size), jnp.float32),
        "b_ih": scale * jax.random.normal(ks[3], (4 * hidden_size,), jnp.float32),
        "b_hh": scale * jax.random.normal(ks[4], (4 * hidden_size,), jnp.float32),
        "w_out": scale * jax.random.normal(ks[5], (vocab_size, hidden_size), jnp.float32),
        "b_out": scale * jax.random.normal(ks[6], (vocab_size,), jnp.float32),
    }


if __name__ == "__main__":
    # Small but lane/sublane-friendly shapes (time-major, PyTorch LSTM default).
    T, B = 8, 8                       # seq_len, batch
    EMB, HID, VOCAB = 128, 128, 256   # H multiple of 128 (lane-aligned gates)
    PAD_ID = 0

    key = jax.random.PRNGKey(0)
    k_tok, k_par = jax.random.split(key)

    tokens = jax.random.randint(k_tok, (T, B), 0, VOCAB, dtype=jnp.int32)
    params = make_params(k_par, VOCAB, EMB, HID, pad_id=PAD_ID)
    prepared = prepare_params(params)

    out = lm_lstm_var_dropout_forward(tokens, prepared)
    out = jax.block_until_ready(out)

    assert out.shape == (T, VOCAB, B), out.shape
    assert out.dtype == jnp.float32

    ref = jax.block_until_ready(_reference_forward(tokens, params))
    max_err = float(jnp.max(jnp.abs(out - ref)))
    assert np.isfinite(max_err) and max_err < 5e-2, f"max_err={max_err}"

    print("KERNEL_OK")
</pallas_src>

<mosaic_0001>
module attributes {stable_mosaic.version = 11 : i64} {
  func.func @_matmul_bias_kernel(%arg0: i32, %arg1: i32, %arg2: i32, %arg3: memref<64x128xbf16, #tpu.memory_space<vmem>>, %arg4: memref<128x512xbf16, #tpu.memory_space<vmem>>, %arg5: memref<1x512xf32, #tpu.memory_space<vmem>>, %arg6: memref<64x512xbf16, #tpu.memory_space<vmem>>, %arg7: memref<64x512xf32, #tpu.memory_space<vmem>>) attributes {dimension_semantics = [#tpu.dimension_semantics<parallel>, #tpu.dimension_semantics<parallel>, #tpu.dimension_semantics<arbitrary>], iteration_bounds = array<i64: 1, 1, 1>, scalar_prefetch = 0 : i64, scratch_operands = 1 : i64, tpu.core_type = #tpu.core_type<tc>, window_params = [{transform_indices = @transform_0, window_bounds = array<i64: 64, 128>}, {transform_indices = @transform_1, window_bounds = array<i64: 128, 512>}, {transform_indices = @transform_2, window_bounds = array<i64: 1, 512>}, {transform_indices = @transform_3, window_bounds = array<i64: 64, 512>}]} {
    %c0_i32 = arith.constant 0 : i32
    %0 = arith.cmpi eq, %arg2, %c0_i32 : i32
    %1 = arith.extui %0 : i1 to i32
    %c0_i32_0 = arith.constant 0 : i32
    %2 = arith.cmpi ne, %1, %c0_i32_0 : i32
    scf.if %2 {
      %cst_10 = arith.constant 0.000000e+00 : f32
      %12 = vector.broadcast %cst_10 : f32 to vector<64x512xf32>
      %c0_11 = arith.constant 0 : index
      %c0_12 = arith.constant 0 : index
      %13 = vector.load %arg7[%c0_11, %c0_12] : memref<64x512xf32, #tpu.memory_space<vmem>>, vector<64x512xf32>
      tpu.vector_store %arg7[%c0_11, %c0_12], %12 {strides = array<i32>} : memref<64x512xf32, #tpu.memory_space<vmem>>, vector<64x512xf32>,
    } else {
    }
    %c0 = arith.constant 0 : index
    %c0_1 = arith.constant 0 : index
    %3 = vector.load %arg7[%c0, %c0_1] : memref<64x512xf32, #tpu.memory_space<vmem>>, vector<64x512xf32>
    %c0_2 = arith.constant 0 : index
    %c0_3 = arith.constant 0 : index
    %4 = vector.load %arg3[%c0_2, %c0_3] : memref<64x128xbf16, #tpu.memory_space<vmem>>, vector<64x128xbf16>
    %c0_4 = arith.constant 0 : index
    %c0_5 = arith.constant 0 : index
    %5 = vector.load %arg4[%c0_4, %c0_5] : memref<128x512xbf16, #tpu.memory_space<vmem>>, vector<128x512xbf16>
    %cst = arith.constant dense<0.000000e+00> : vector<64x512xf32>
    %6 = tpu.matmul %4, %5, %cst {dimension_numbers = #tpu.dot_dimension_numbers<[1], [0], [0], [1], [0, 0, 1, 1], [], []>} : vector<64x128xbf16>, vector<128x512xbf16>, vector<64x512xf32> -> vector<64x512xf32>
    %7 = arith.addf %3, %6 : vector<64x512xf32>
    %c0_6 = arith.constant 0 : index
    %c0_7 = arith.constant 0 : index
    %8 = vector.load %arg7[%c0_6, %c0_7] : memref<64x512xf32, #tpu.memory_space<vmem>>, vector<64x512xf32>
    tpu.vector_store %arg7[%c0_6, %c0_7], %7 {strides = array<i32>} : memref<64x512xf32, #tpu.memory_space<vmem>>, vector<64x512xf32>,
    %c0_i32_8 = arith.constant 0 : i32
    %9 = arith.cmpi eq, %arg2, %c0_i32_8 : i32
    %10 = arith.extui %9 : i1 to i32
    %c0_i32_9 = arith.constant 0 : i32
    %11 = arith.cmpi ne, %10, %c0_i32_9 : i32
    scf.if %11 {
      %c0_10 = arith.constant 0 : index
      %c0_11 = arith.constant 0 : index
      %12 = vector.load %arg7[%c0_10, %c0_11] : memref<64x512xf32, #tpu.memory_space<vmem>>, vector<64x512xf32>
      %c0_12 = arith.constant 0 : index
      %c0_13 = arith.constant 0 : index
      %13 = vector.load %arg5[%c0_12, %c0_13] : memref<1x512xf32, #tpu.memory_space<vmem>>, vector<1x512xf32>
      %14 = vector.broadcast %13 : vector<1x512xf32> to vector<64x512xf32>
      %15 = arith.addf %12, %14 : vector<64x512xf32>
      %16 = arith.truncf %15 : vector<64x512xf32> to vector<64x512xbf16>
      %c0_14 = arith.constant 0 : index
      %c0_15 = arith.constant 0 : index
      %17 = vector.load %arg6[%c0_14, %c0_15] : memref<64x512xbf16, #tpu.memory_space<vmem>>, vector<64x512xbf16>
      tpu.vector_store %arg6[%c0_14, %c0_15], %16 {strides = array<i32>} : memref<64x512xbf16, #tpu.memory_space<vmem>>, vector<64x512xbf16>,
    } else {
    }
    return
  }
  func.func @transform_0(%arg0: i32, %arg1: i32, %arg2: i32) -> (i32, i32) {
    %c0_i32 = arith.constant 0 : i32
    return %arg0, %arg2 : i32, i32
  }
  func.func @transform_1(%arg0: i32, %arg1: i32, %arg2: i32) -> (i32, i32) {
    %c0_i32 = arith.constant 0 : i32
    return %arg2, %arg1 : i32, i32
  }
  func.func @transform_2(%arg0: i32, %arg1: i32, %arg2: i32) -> (i32, i32) {
    %c0_i32 = arith.constant 0 : i32
    %c0_i32_0 = arith.constant 0 : i32
    return %c0_i32, %arg1 : i32, i32
  }
  func.func @transform_3(%arg0: i32, %arg1: i32, %arg2: i32) -> (i32, i32) {
    %c0_i32 = arith.constant 0 : i32
    return %arg0, %arg1 : i32, i32
  }
}

</mosaic_0001>

<bundles_post_ra>
// kernel: tpu_custom_call.1
= control target key start
LH: loop header
LB: loop body
LE: loop exit
PB: predicated region body
PF: predicated region fallthrough
CT: control target
= control target key end

     0   :  { %8 = vsyncpa [#allocation4], 0  ;;  %s1086_s0 = inlined_call_operand.hbm [shape: bf16[64,128], index: 0, kind: input, shape index: {}]   ;;  %s1087_s1 = inlined_call_operand.hbm [shape: bf16[128,512], index: 1, kind: input, shape index: {}]   ;;  %s1088_s2 = inlined_call_operand.vmem [shape: f32[1,512], index: 2, kind: input, shape index: {}]   ;;  %s1089_s3 = inlined_call_operand.hbm [shape: bf16[64,512], index: 3, kind: output, shape index: {}]  }
   0x1   :  { %9 = vsyncpa [#allocation7], 0 }
   0x2   :  { %10 = vsyncpa [#allocation5], 0  ;;  %s965_s12 = smov [#allocation3]   ;;  %s893_s16 = scalar_lea.hbm %s1086_s0, 512 }
   0x3   :  { %s16_s13 = sshll.u32 %s965_s12, 4  ;;  %p894_p0 = scmp.ne.s32.totalorder %s1086_s0, %s893_s16  ;;  %s17_s13 = int_to_ptr.vmem [resolvable:$true] %s16_s13 }
   0x4   :  { %p897_p1 = scmp.lt.u32.totalorder %s893_s16, %s1086_s0 }
   0x6   :  { %p899_p2 = pnand %p897_p1, %p894_p0 }
   0x8   :  { %902 = shalt.err (!%p899_p2)
}
   0x9   :  { %s903_s21 = scalar_lea.vmem %s17_s13, 512  ;;  %p908_p4 = scmp.lt.s32.totalorder %s17_s13, %s17_s13 }
   0xa   :  { %p904_p3 = scmp.ne.s32.totalorder %s17_s13, %s903_s21  ;;  %p909_p5 = scmp.lt.s32.totalorder %s903_s21, %s903_s21 }
   0xc   :  { %p910_p6 = por %p909_p5, %p908_p4 }
   0xe   :  { %p911_p7 = pnand %p910_p6, %p904_p3 }
  0x10   :  { %914 = shalt.err (!%p911_p7)
}
  0x11   :  { %s966_s22 = smov 64   ;;  %s967_s23 = smov 4  }
  0x12   :  { %22 = dma.hbm_to_vmem [thread:$0]  %s1086_s0, 512, %s17_s13, [#allocation4], %s966_s22, %s966_s22, %s967_s23  }
  0x13   :  { %s968_s26 = smov [#allocation6]   ;;  %s915_s30 = scalar_lea.hbm %s1087_s1, 4096 }
  0x14   :  { %s28_s27 = sshll.u32 %s968_s26, 4  ;;  %p916_p8 = scmp.ne.s32.totalorder %s1087_s1, %s915_s30  ;;  %s29_s27 = int_to_ptr.vmem [resolvable:$true] %s28_s27 }
  0x15   :  { %p919_p9 = scmp.lt.u32.totalorder %s915_s30, %s1087_s1 }
  0x17   :  { %p921_p10 = pnand %p919_p9, %p916_p8 }
  0x19   :  { %924 = shalt.err (!%p921_p10)
}
  0x1a   :  { %s925_s8 = scalar_lea.vmem %s29_s27, 4096  ;;  %p930_p12 = scmp.lt.s32.totalorder %s29_s27, %s29_s27 }
  0x1b   :  { %p926_p11 = scmp.ne.s32.totalorder %s29_s27, %s925_s8  ;;  %p931_p13 = scmp.lt.s32.totalorder %s925_s8, %s925_s8 }
  0x1d   :  { %p932_p0 = por %p931_p13, %p930_p12 }
  0x1f   :  { %p933_p1 = pnand %p932_p0, %p926_p11 }
  0x21   :  { %936 = shalt.err (!%p933_p1)
}
  0x22   :  { %s969_s0 = smov 256   ;;  %s970_s9 = smov 16  }
  0x23   :  { %34 = dma.hbm_to_vmem [thread:$0]  %s1087_s1, 4096, %s29_s27, [#allocation7], %s969_s0, %s969_s0, %s970_s9  }
  0x24   :  { %959 = dma.done.wait [#allocation4], 512  }
  0x25   :  { %960 = vsyncadd [#allocation4], 4294966784 }
  0x26   :  { %961 = dma.done.wait [#allocation7], 4096  }
  0x27   :  { %962 = vsyncadd [#allocation7], 4294963200  ;;  %v971_v0 = vmov 0   ;;  %v841_v1 = vld [vmem:[#allocation6 + $0x4] ss:$16 sps:$4 sm:$0xff]   ;;  %v890_v34 = vld [vmem:[#allocation3 + $0x8] sm:$0xff]   ;;  %v583_v37 = vlaneseq }
  0x28   :  { %368 = vmatprep.mubr.bf16.mxu0 %v971_v0  ;;  %441 = vmatprep.mubr.bf16.mxu1 %v971_v0  ;;  %v843_v2 = vld [vmem:[#allocation6 + $0xc] ss:$16 sps:$4 sm:$0xff]   ;;  %v845_v3 = vld [vmem:[#allocation6] ss:$16 sps:$4 sm:$0xff]   ;;  %v846_v4 = vld [vmem:[#allocation6 + $0x8] ss:$16 sps:$4 sm:$0xff]  }
  0x29   :  { %336 = vmatprep.subr.bf16.mxu0 %v841_v1  ;;  %409 = vmatprep.subr.bf16.mxu1 %v843_v2  ;;  %v847_v5 = vld [vmem:[#allocation6 + $0x24] ss:$16 sps:$4 sm:$0xff]   ;;  %v849_v6 = vld [vmem:[#allocation6 + $0x2c] ss:$16 sps:$4 sm:$0xff]   ;;  %v851_v7 = vld [vmem:[#allocation6 + $0x20] ss:$16 sps:$4 sm:$0xff]  }
  0x2a   :  { %337 = vmatpush1.bf16.msra.mxu0 %v845_v3  ;;  %410 = vmatpush1.bf16.msra.mxu1 %v846_v4  ;;  %v852_v8 = vld [vmem:[#allocation6 + $0x28] ss:$16 sps:$4 sm:$0xff]   ;;  %v853_v9 = vld [vmem:[#allocation6 + $0x44] ss:$16 sps:$4 sm:$0xff]   ;;  %v855_v10 = vld [vmem:[#allocation6 + $0x4c] ss:$16 sps:$4 sm:$0xff]  }
  0x2b   :  { %338 = vmatprep.subr.bf16.mxu0 %v847_v5  ;;  %411 = vmatprep.subr.bf16.mxu1 %v849_v6  ;;  %v857_v11 = vld [vmem:[#allocation6 + $0x40] ss:$16 sps:$4 sm:$0xff]   ;;  %v858_v12 = vld [vmem:[#allocation6 + $0x48] ss:$16 sps:$4 sm:$0xff]   ;;  %v859_v13 = vld [vmem:[#allocation6 + $0x64] ss:$16 sps:$4 sm:$0xff]  }
  0x2c   :  { %v861_v14 = vld [vmem:[#allocation6 + $0x6c] ss:$16 sps:$4 sm:$0xff]   ;;  %v863_v15 = vld [vmem:[#allocation6 + $0x60] ss:$16 sps:$4 sm:$0xff]   ;;  %v864_v16 = vld [vmem:[#allocation6 + $0x68] ss:$16 sps:$4 sm:$0xff]  }
  0x2d   :  { %v865_v17 = vld [vmem:[#allocation6 + $0x84] ss:$16 sps:$4 sm:$0xff]   ;;  %v867_v18 = vld [vmem:[#allocation6 + $0x8c] ss:$16 sps:$4 sm:$0xff]   ;;  %v869_v19 = vld [vmem:[#allocation6 + $0x80] ss:$16 sps:$4 sm:$0xff]  }
  0x2e   :  { %339 = vmatpush1.bf16.msra.mxu0 %v851_v7  ;;  %412 = vmatpush1.bf16.msra.mxu1 %v852_v8  ;;  %v870_v20 = vld [vmem:[#allocation6 + $0x88] ss:$16 sps:$4 sm:$0xff]   ;;  %v871_v21 = vld [vmem:[#allocation6 + $0xa4] ss:$16 sps:$4 sm:$0xff]   ;;  %v873_v22 = vld [vmem:[#allocation6 + $0xac] ss:$16 sps:$4 sm:$0xff]  }
  0x2f   :  { %340 = vmatprep.subr.bf16.mxu0 %v853_v9  ;;  %413 = vmatprep.subr.bf16.mxu1 %v855_v10  ;;  %v875_v23 = vld [vmem:[#allocation6 + $0xa0] ss:$16 sps:$4 sm:$0xff]   ;;  %v876_v24 = vld [vmem:[#allocation6 + $0xa8] ss:$16 sps:$4 sm:$0xff]   ;;  %v877_v25 = vld [vmem:[#allocation6 + $0xc4] ss:$16 sps:$4 sm:$0xff]  }
  0x30   :  { %v879_v26 = vld [vmem:[#allocation6 + $0xcc] ss:$16 sps:$4 sm:$0xff]   ;;  %v881_v27 = vld [vmem:[#allocation6 + $0xc0] ss:$16 sps:$4 sm:$0xff]   ;;  %v882_v28 = vld [vmem:[#allocation6 + $0xc8] ss:$16 sps:$4 sm:$0xff]  }
  0x31   :  { %v883_v29 = vld [vmem:[#allocation6 + $0xe4] ss:$16 sps:$4 sm:$0xff]   ;;  %v885_v30 = vld [vmem:[#allocation6 + $0xec] ss:$16 sps:$4 sm:$0xff]   ;;  %v887_v31 = vld [vmem:[#allocation6 + $0xe0] ss:$16 sps:$4 sm:$0xff]  }
  0x32   :  { %341 = vmatpush1.bf16.msra.mxu0 %v857_v11  ;;  %414 = vmatpush1.bf16.msra.mxu1 %v858_v12  ;;  %v888_v32 = vld [vmem:[#allocation6 + $0xe8] ss:$16 sps:$4 sm:$0xff]   ;;  %v889_v33 = vld [vmem:[#allocation3] sm:$0xff]   ;;  %v891_v35 = vld [vmem:[#allocation3 + $0x10] sm:$0xff]   ;;  %v584_v38 = vshrl.u32 %v583_v37, 7 }
  0x33   :  { %342 = vmatprep.subr.bf16.mxu0 %v859_v13  ;;  %415 = vmatprep.subr.bf16.mxu1 %v861_v14  ;;  %v892_v36 = vld [vmem:[#allocation3 + $0x18] sm:$0xff]   ;;  %v581_v41 = vld [vmem:[%s1088_s2] sm:$0xf]  ;;  %s972_s2 = smov [#allocation8]  }
  0x34   :  { %v585_v39 = vsub.s32 0, %v584_v38  ;;  %v593_v40 = vsub.s32 2, %v584_v38  ;;  %v589_v42 = vsub.s32 1, %v584_v38  ;;  %v597_v43 = vsub.s32 3, %v584_v38  ;;  %s752_s13 = sshll.u32 %s972_s2, 4  ;;  %s753_s13 = int_to_ptr.vmem [resolvable:$true] %s752_s13 }
  0x35   :  { %s937_s14 = scalar_lea.vmem %s753_s13, 2048  ;;  %p942_p3 = scmp.lt.s32.totalorder %s753_s13, %s753_s13 }
  0x36   :  { %343 = vmatpush1.bf16.msra.mxu0 %v863_v15  ;;  %416 = vmatpush1.bf16.msra.mxu1 %v864_v16  ;;  %v1031_v44 = vrot.slane %v581_v41, %v585_v39  ;;  %v1033_v45 = vrot.slane %v581_v41, %v593_v40  ;;  %v1035_v46 = vrot.slane %v581_v41, %v589_v42  ;;  %p938_p2 = scmp.ne.s32.totalorder %s753_s13, %s937_s14  ;;  %p943_p4 = scmp.lt.s32.totalorder %s937_s14, %s937_s14 }
  0x37   :  { %344 = vmatprep.subr.bf16.mxu0 %v865_v17  ;;  %417 = vmatprep.subr.bf16.mxu1 %v867_v18  ;;  %v1037_v47 = vrot.slane %v581_v41, %v597_v43 }
  0x38   :  { %p944_p5 = por %p943_p4, %p942_p3 }
  0x3a   :  { %345 = vmatpush1.bf16.msra.mxu0 %v869_v19  ;;  %418 = vmatpush1.bf16.msra.mxu1 %v870_v20  ;;  %p945_p6 = pnand %p944_p5, %p938_p2 }
  0x3b   :  { %346 = vmatprep.subr.bf16.mxu0 %v871_v21  ;;  %419 = vmatprep.subr.bf16.mxu1 %v873_v22 }
  0x3e   :  { %347 = vmatpush1.bf16.msra.mxu0 %v875_v23  ;;  %420 = vmatpush1.bf16.msra.mxu1 %v876_v24 }
  0x3f   :  { %348 = vmatprep.subr.bf16.mxu0 %v877_v25  ;;  %421 = vmatprep.subr.bf16.mxu1 %v879_v26 }
  0x42   :  { %349 = vmatpush1.bf16.msra.mxu0 %v881_v27  ;;  %422 = vmatpush1.bf16.msra.mxu1 %v882_v28 }
  0x43   :  { %350 = vmatprep.subr.bf16.mxu0 %v883_v29  ;;  %423 = vmatprep.subr.bf16.mxu1 %v885_v30 }
  0x46   :  { %351 = vmatpush1.bf16.msra.mxu0 %v887_v31  ;;  %424 = vmatpush1.bf16.msra.mxu1 %v888_v32 }
  0x49   :  { %369 = vmatmul.mubr.bf16.vlgmr.msra.gmra.mrb[0].mxu0 %v889_v33  ;;  %442 = vmatmul.mubr.bf16.vlgmr.msra.gmra.mrb[0].mxu1 %v889_v33 }
  0x4a   :  { %378 = vmatprep.mubr.bf16.mxu0 %v971_v0  ;;  %451 = vmatprep.mubr.bf16.mxu1 %v971_v0 }
  0x51   :  { %379 = vmatmul.mubr.bf16.gmra.mrb[4].mxu0 %v890_v34  ;;  %452 = vmatmul.mubr.bf16.gmra.mrb[4].mxu1 %v890_v34 }
  0x52   :  { %388 = vmatprep.mubr.bf16.mxu0 %v971_v0  ;;  %461 = vmatprep.mubr.bf16.mxu1 %v971_v0 }
  0x59   :  { %389 = vmatmul.mubr.bf16.gmra.mrb[8].mxu0 %v891_v35  ;;  %462 = vmatmul.mubr.bf16.gmra.mrb[8].mxu1 %v891_v35 }
  0x5a   :  { %398 = vmatprep.mubr.bf16.mxu0 %v971_v0  ;;  %471 = vmatprep.mubr.bf16.mxu1 %v971_v0 }
  0x61   :  { %399 = vmatmul.mubr.bf16.gmra.mrb[12].mxu0 %v892_v36  ;;  %472 = vmatmul.mubr.bf16.gmra.mrb[12].mxu1 %v892_v36 }
 0x11c   :  { %v370_v48 = vpop.f32.mrb[0].mxu0  ;;  %v443_v49 = vpop.f32.mrb[0].mxu1 }
 0x11d   :  { %v603_v50 = vadd.f32 %v1031_v44, %v370_v48  ;;  %v605_v51 = vadd.f32 %v1033_v45, %v443_v49  ;;  %v372_v52 = vpop.f32.mrb[1].mxu0  ;;  %v445_v53 = vpop.f32.mrb[1].mxu1 }
 0x11e   :  { %v604_v54 = vadd.f32 %v1035_v46, %v372_v52  ;;  %v606_v55 = vadd.f32 %v1037_v47, %v445_v53  ;;  %v374_v56 = vpop.f32.mrb[2].mxu0  ;;  %v447_v57 = vpop.f32.mrb[2].mxu1 }
 0x11f   :  { %v607_v58 = vadd.f32 %v1031_v44, %v374_v56  ;;  %v609_v59 = vadd.f32 %v1033_v45, %v447_v57  ;;  %v376_v60 = vpop.f32.mrb[3].mxu0  ;;  %v449_v61 = vpop.f32.mrb[3].mxu1 }
 0x120   :  { %v817_v62 = vpack.c.bf16 %v604_v54, %v603_v50  ;;  %v818_v63 = vpack.c.bf16 %v606_v55, %v605_v51  ;;  %v608_v0 = vadd.f32 %v1035_v46, %v376_v60  ;;  %v610_v1 = vadd.f32 %v1037_v47, %v449_v61 }
 0x122   :  { %731 = vst [vmem:[#allocation8] sm:$0xff] %v817_v62  ;;  %732 = vst [vmem:[#allocation8 + $0x8] sm:$0xff] %v818_v63  ;;  %v819_v2 = vpack.c.bf16 %v608_v0, %v607_v58  ;;  %v820_v3 = vpack.c.bf16 %v610_v1, %v609_v59 }
 0x124   :  { %733 = vst [vmem:[#allocation8 + $0x10] sm:$0xff] %v819_v2  ;;  %734 = vst [vmem:[#allocation8 + $0x18] sm:$0xff] %v820_v3  ;;  %v380_v4 = vpop.f32.mrb[4].mxu0  ;;  %v453_v5 = vpop.f32.mrb[4].mxu1 }
 0x125   :  { %v611_v6 = vadd.f32 %v1031_v44, %v380_v4  ;;  %v613_v7 = vadd.f32 %v1033_v45, %v453_v5  ;;  %v382_v8 = vpop.f32.mrb[5].mxu0  ;;  %v455_v9 = vpop.f32.mrb[5].mxu1 }
 0x126   :  { %v612_v10 = vadd.f32 %v1035_v46, %v382_v8  ;;  %v614_v11 = vadd.f32 %v1037_v47, %v455_v9  ;;  %v384_v12 = vpop.f32.mrb[6].mxu0  ;;  %v457_v13 = vpop.f32.mrb[6].mxu1 }
 0x127   :  { %v615_v14 = vadd.f32 %v1031_v44, %v384_v12  ;;  %v617_v15 = vadd.f32 %v1033_v45, %v457_v13  ;;  %v386_v16 = vpop.f32.mrb[7].mxu0  ;;  %v459_v17 = vpop.f32.mrb[7].mxu1 }
 0x128   :  { %v821_v18 = vpack.c.bf16 %v612_v10, %v611_v6  ;;  %v822_v19 = vpack.c.bf16 %v614_v11, %v613_v7  ;;  %v616_v20 = vadd.f32 %v1035_v46, %v386_v16  ;;  %v618_v21 = vadd.f32 %v1037_v47, %v459_v17 }
 0x12a   :  { %735 = vst [vmem:[#allocation8 + $0x20] sm:$0xff] %v821_v18  ;;  %736 = vst [vmem:[#allocation8 + $0x28] sm:$0xff] %v822_v19  ;;  %v823_v22 = vpack.c.bf16 %v616_v20, %v615_v14  ;;  %v824_v23 = vpack.c.bf16 %v618_v21, %v617_v15 }
 0x12c   :  { %737 = vst [vmem:[#allocation8 + $0x30] sm:$0xff] %v823_v22  ;;  %738 = vst [vmem:[#allocation8 + $0x38] sm:$0xff] %v824_v23  ;;  %v390_v24 = vpop.f32.mrb[8].mxu0  ;;  %v463_v25 = vpop.f32.mrb[8].mxu1 }
 0x12d   :  { %v619_v26 = vadd.f32 %v1031_v44, %v390_v24  ;;  %v621_v27 = vadd.f32 %v1033_v45, %v463_v25  ;;  %v392_v28 = vpop.f32.mrb[9].mxu0  ;;  %v465_v29 = vpop.f32.mrb[9].mxu1 }
 0x12e   :  { %v620_v30 = vadd.f32 %v1035_v46, %v392_v28  ;;  %v622_v31 = vadd.f32 %v1037_v47, %v465_v29  ;;  %v394_v32 = vpop.f32.mrb[10].mxu0  ;;  %v467_v33 = vpop.f32.mrb[10].mxu1 }
 0x12f   :  { %v623_v34 = vadd.f32 %v1031_v44, %v394_v32  ;;  %v625_v35 = vadd.f32 %v1033_v45, %v467_v33  ;;  %v396_v36 = vpop.f32.mrb[11].mxu0  ;;  %v469_v37 = vpop.f32.mrb[11].mxu1 }
 0x130   :  { %v825_v38 = vpack.c.bf16 %v620_v30, %v619_v26  ;;  %v826_v39 = vpack.c.bf16 %v622_v31, %v621_v27  ;;  %v624_v40 = vadd.f32 %v1035_v46, %v396_v36  ;;  %v626_v41 = vadd.f32 %v1037_v47, %v469_v37 }
 0x132   :  { %739 = vst [vmem:[#allocation8 + $0x40] sm:$0xff] %v825_v38  ;;  %740 = vst [vmem:[#allocation8 + $0x48] sm:$0xff] %v826_v39  ;;  %v827_v42 = vpack.c.bf16 %v624_v40, %v623_v34  ;;  %v828_v43 = vpack.c.bf16 %v626_v41, %v625_v35 }
 0x134   :  { %741 = vst [vmem:[#allocation8 + $0x50] sm:$0xff] %v827_v42  ;;  %742 = vst [vmem:[#allocation8 + $0x58] sm:$0xff] %v828_v43  ;;  %v400_v48 = vpop.f32.mrb[12].mxu0  ;;  %v473_v49 = vpop.f32.mrb[12].mxu1 }
 0x135   :  { %v627_v50 = vadd.f32 %v1031_v44, %v400_v48  ;;  %v629_v51 = vadd.f32 %v1033_v45, %v473_v49  ;;  %v402_v52 = vpop.f32.mrb[13].mxu0  ;;  %v475_v53 = vpop.f32.mrb[13].mxu1 }
 0x136   :  { %v628_v54 = vadd.f32 %v1035_v46, %v402_v52  ;;  %v630_v55 = vadd.f32 %v1037_v47, %v475_v53  ;;  %v404_v56 = vpop.f32.mrb[14].mxu0  ;;  %v477_v57 = vpop.f32.mrb[14].mxu1 }
 0x137   :  { %v631_v58 = vadd.f32 %v1031_v44, %v404_v56  ;;  %v633_v59 = vadd.f32 %v1033_v45, %v477_v57  ;;  %v406_v60 = vpop.f32.mrb[15].mxu0  ;;  %v479_v61 = vpop.f32.mrb[15].mxu1 }
 0x138   :  { %v829_v62 = vpack.c.bf16 %v628_v54, %v627_v50  ;;  %v830_v63 = vpack.c.bf16 %v630_v55, %v629_v51  ;;  %v632_v0 = vadd.f32 %v1035_v46, %v406_v60  ;;  %v634_v1 = vadd.f32 %v1037_v47, %v479_v61 }
 0x13a   :  { %743 = vst [vmem:[#allocation8 + $0x60] sm:$0xff] %v829_v62  ;;  %744 = vst [vmem:[#allocation8 + $0x68] sm:$0xff] %v830_v63  ;;  %v831_v2 = vpack.c.bf16 %v632_v0, %v631_v58  ;;  %v832_v3 = vpack.c.bf16 %v634_v1, %v633_v59 }
 0x13c   :  { %745 = vst [vmem:[#allocation8 + $0x70] sm:$0xff] %v831_v2  ;;  %746 = vst [vmem:[#allocation8 + $0x78] sm:$0xff] %v832_v3 }
 0x13d   :  { %948 = shalt.err (!%p945_p6)
}
 0x13e   :  { %s949_s17 = scalar_lea.hbm %s1089_s3, 2048 }
 0x13f   :  { %p950_p7 = scmp.ne.s32.totalorder %s1089_s3, %s949_s17  ;;  %p953_p8 = scmp.lt.u32.totalorder %s949_s17, %s1089_s3 }
 0x141   :  { %p955_p9 = pnand %p953_p8, %p950_p7 }
 0x143   :  { %958 = shalt.err (!%p955_p9)
}
 0x144   :  { %758 = dma.vmem_to_hbm [thread:$0]  %s753_s13, 2048, %s1089_s3, [#allocation5], %s969_s0, %s969_s0, %s970_s9  }
 0x145   :  { %963 = dma.done.wait [#allocation5], 2048  }
 0x146   :  { %964 = vsyncadd [#allocation5], 4294965248 }
 0x147   :  { %762 = vsyncpa [#allocation4], 1 }
 0x148   :  { %763 = vsyncpa [#allocation7], 1 }
 0x149   :  { %764 = vsyncpa [#allocation5], 1 }

</bundles_post_ra>
